<compile_context>
chip_gen: v6e
topology: v6e:2x2x1
jax: 0.10.0
libtpu: 0.0.40
codegen_flags: <defaults>
</compile_context>

<pallas_src>
from functools import partial

import jax
import jax.numpy as jnp
from jax.experimental import pallas as pl
from jax.experimental.pallas import tpu as pltpu


def _evonorm_kernel(x_ref, p_ref, o_ref, *, cg, n, eps):
    """x_ref: (Nb, Cb, HW); p_ref: (3, Cb, 1) packed [v, gamma, beta]."""
    x = x_ref[...].astype(jnp.float32)               # (Nb, Cb, HW), f32 math
    Nb, Cb, HW = x.shape
    gb = Cb // cg                                    # groups in this channel slab

    # ---- fused single-pass group statistics --------------------------------
    # lane-wise per-channel sum and sum-of-squares (one traversal of x, f32)
    s_c = jnp.sum(x, axis=2, keepdims=True)          # (Nb, Cb, 1)
    ss_c = jnp.sum(x * x, axis=2, keepdims=True)     # (Nb, Cb, 1)

    # group combine on tiny vectors; channels stay on the sublane axis
    s_g = jnp.sum(s_c.reshape(Nb * gb, cg, 1), axis=1, keepdims=True)   # (Nb*gb,1,1)
    ss_g = jnp.sum(ss_c.reshape(Nb * gb, cg, 1), axis=1, keepdims=True)

    inv_n = 1.0 / n
    denom = (n - 1) if n > 1 else 1                  # guard 1-element groups (ddof=1)
    mean_g = s_g * inv_n
    # unbiased variance (torch.var default). f32 accumulation keeps the
    # E[x^2] - E[x]^2 cancellation benign at normalisation scales.
    var_g = (ss_g - s_g * mean_g) * (1.0 / denom)
    inv_std_g = jax.lax.rsqrt(var_g + eps)           # tiny vector: rsqrt is free
    inv_std_c = jnp.broadcast_to(inv_std_g, (Nb * gb, cg, 1)).reshape(Nb, Cb, 1)

    # ---- fused swish-like numerator + affine (single store of the block) ---
    vh = 0.5 * p_ref[0]                              # (Cb, 1): v / 2 for tanh form
    half_scale = (0.5 * p_ref[1]) * inv_std_c        # (Nb, Cb, 1): gamma / (2*std)
    beta = p_ref[2]                                  # (Cb, 1)

    # x * sigmoid(v*x) == 0.5 * x * (1 + tanh(0.5*v*x)): one EUP op per element
    t = jnp.tanh(vh * x)
    o_ref[...] = ((x * (1.0 + t)) * half_scale + beta).astype(o_ref.dtype)


def _vmem_capacity_bytes():
    try:
        cap = getattr(pltpu.get_tpu_info(), "vmem_capacity_bytes", None)
        if cap:
            return int(cap)
    except Exception:
        pass
    return 64 << 20                                  # conservative: v7x physical VMEM


def evonorm2d(x, v, gamma, beta, *, groups, eps=1e-5):
    """x: (N, C, H, W); v/gamma/beta: (1, C, 1, 1). Returns (N, C, H, W)."""
    N, C, H, W = x.shape
    assert C % groups == 0
    cg = C // groups
    HW = H * W
    x2 = x.reshape(N, C, HW)
    # NOTE: the block's last dim always spans the full flattened H*W, so the
    # BlockSpec stays legal for non-128-multiple feature maps; 128-multiple H*W
    # (as here) gives lane-dense, unmasked stores.

    params = jnp.stack(
        [v.reshape(C, 1), gamma.reshape(C, 1), beta.reshape(C, 1)], axis=0
    ).astype(jnp.float32)                            # (3, C, 1)

    itemsize = jnp.dtype(x.dtype).itemsize
    # generation-aware scoped-VMEM request: ~72% of physical
    # (v7x: ~46 MiB, v5e/v6e: ~92 MiB) instead of a fixed 96 MiB.
    vmem_limit = int(0.72 * _vmem_capacity_bytes())

    def block_vmem(nb, cb):
        # double-buffered in/out blocks at I/O dtype + f32 elementwise temps
        io = nb * cb * HW * itemsize
        f32 = nb * cb * HW * 4
        return 4 * io + 3 * f32

    # sublane multiple required when the channel slab does not span full C
    sub = {4: 8, 2: 16, 1: 32}.get(itemsize, 8)
    target_block_io = 4 << 20                        # ~4 MiB blocks: past the HBM knee

    if block_vmem(1, C) <= vmem_limit:
        # keep the full channel axis per block; grow the batch chunk
        cb = C
        nb_vmem = max(1, vmem_limit // block_vmem(1, C))
        nb_tgt = max(1, target_block_io // max(1, C * HW * itemsize))
        nb = int(min(N, nb_vmem, nb_tgt))
    else:
        # channel-tiling at group granularity: stats never cross a group, so the
        # kernel stays single-pass over x even for very large per-sample C*H*W.
        nb = 1
        cb = None
        for gb in range(groups, 0, -1):
            if groups % gb:
                continue
            c_slab = gb * cg
            if c_slab != C and c_slab % sub:
                continue
            if block_vmem(1, c_slab) <= vmem_limit:
                cb = c_slab
                break
        if cb is None:
            cb = cg                                  # TODO(synk): needs HW-split stats

    grid = (pl.cdiv(N, nb), C // cb)

    elems = N * C * HW
    cost = pl.CostEstimate(
        flops=8 * elems,                             # sums, squares, swish/affine FMAs
        transcendentals=elems,                       # one tanh per element
        bytes_accessed=2 * elems * itemsize + 3 * C * 4,
    )

    kernel = partial(_evonorm_kernel, cg=cg, n=cg * HW, eps=eps)
    out = pl.pallas_call(
        kernel,
        out_shape=jax.ShapeDtypeStruct((N, C, HW), x.dtype),
        grid=grid,
        in_specs=[
            pl.BlockSpec((nb, cb, HW), lambda ni, ci: (ni, ci, 0)),
            pl.BlockSpec((3, cb, 1), lambda ni, ci: (0, ci, 0)),
        ],
        out_specs=pl.BlockSpec((nb, cb, HW), lambda ni, ci: (ni, ci, 0)),
        compiler_params=pltpu.CompilerParams(
            dimension_semantics=("parallel", "parallel"),
            vmem_limit_bytes=vmem_limit,
        ),
        cost_estimate=cost,
    )(x2, params)
    return out.reshape(N, C, H, W)


def _reference(x, v, gamma, beta, *, groups, eps=1e-5):
    # pure-JAX reference mirroring the PyTorch forward (unbiased variance)
    N, C, H, W = x.shape
    cg = C // groups
    xr = x.reshape(N, groups, cg, H, W)
    var = jnp.var(xr, axis=(2, 3, 4), keepdims=True, ddof=1)
    std = jnp.sqrt(var + eps)
    std = jnp.broadcast_to(std, xr.shape).reshape(N, C, H, W)
    num = x * jax.nn.sigmoid(v * x)
    return num / std * gamma + beta


if __name__ == "__main__":
    N, C, H, W = 2, 32, 16, 16
    GROUPS = 8

    key = jax.random.PRNGKey(0)
    kx, kv, kg, kb = jax.random.split(key, 4)
    x = jax.random.normal(kx, (N, C, H, W), dtype=jnp.float32)
    # deterministic parameter init (module defaults are ones/zeros; perturb
    # deterministically so the v/affine paths are actually exercised)
    v = 1.0 + 0.1 * jax.random.normal(kv, (1, C, 1, 1), dtype=jnp.float32)
    gamma = 1.0 + 0.1 * jax.random.normal(kg, (1, C, 1, 1), dtype=jnp.float32)
    beta = 0.1 * jax.random.normal(kb, (1, C, 1, 1), dtype=jnp.float32)

    out = evonorm2d(x, v, gamma, beta, groups=GROUPS, eps=1e-5)
    out = jax.block_until_ready(out)

    ref = _reference(x, v, gamma, beta, groups=GROUPS, eps=1e-5)
    assert out.shape == (N, C, H, W)
    assert jnp.allclose(out, ref, atol=1e-5, rtol=1e-5)
    print("KERNEL_OK")
</pallas_src>

<mosaic_0001>
module attributes {stable_mosaic.version = 11 : i64} {
  func.func @_evonorm_kernel(%arg0: i32, %arg1: i32, %arg2: memref<2x32x256xf32, #tpu.memory_space<vmem>>, %arg3: memref<3x32x1xf32, #tpu.memory_space<vmem>>, %arg4: memref<2x32x256xf32, #tpu.memory_space<vmem>>) attributes {dimension_semantics = [#tpu.dimension_semantics<parallel>, #tpu.dimension_semantics<parallel>], iteration_bounds = array<i64: 1, 1>, scalar_prefetch = 0 : i64, scratch_operands = 0 : i64, tpu.core_type = #tpu.core_type<tc>, window_params = [{transform_indices = @transform_0, window_bounds = array<i64: 2, 32, 256>}, {transform_indices = @transform_1, window_bounds = array<i64: 3, 32, 1>}, {transform_indices = @transform_2, window_bounds = array<i64: 2, 32, 256>}]} {
    %c0 = arith.constant 0 : index
    %c0_0 = arith.constant 0 : index
    %c0_1 = arith.constant 0 : index
    %0 = vector.load %arg2[%c0, %c0_0, %c0_1] : memref<2x32x256xf32, #tpu.memory_space<vmem>>, vector<2x32x256xf32>
    %cst = arith.constant dense<0.000000e+00> : vector<2x32xf32>
    %1 = vector.multi_reduction <add>, %0, %cst [2] : vector<2x32x256xf32> to vector<2x32xf32>
    %2 = vector.shape_cast %1 : vector<2x32xf32> to vector<2x32x1xf32>
    %3 = arith.mulf %0, %0 : vector<2x32x256xf32>
    %cst_2 = arith.constant dense<0.000000e+00> : vector<2x32xf32>
    %4 = vector.multi_reduction <add>, %3, %cst_2 [2] : vector<2x32x256xf32> to vector<2x32xf32>
    %5 = vector.shape_cast %4 : vector<2x32xf32> to vector<2x32x1xf32>
    %6 = vector.shape_cast %2 : vector<2x32x1xf32> to vector<16x4x1xf32>
    %cst_3 = arith.constant dense<0.000000e+00> : vector<16x1xf32>
    %7 = vector.multi_reduction <add>, %6, %cst_3 [1] : vector<16x4x1xf32> to vector<16x1xf32>
    %8 = vector.shape_cast %7 : vector<16x1xf32> to vector<16x1x1xf32>
    %9 = vector.shape_cast %5 : vector<2x32x1xf32> to vector<16x4x1xf32>
    %cst_4 = arith.constant dense<0.000000e+00> : vector<16x1xf32>
    %10 = vector.multi_reduction <add>, %9, %cst_4 [1] : vector<16x4x1xf32> to vector<16x1xf32>
    %11 = vector.shape_cast %10 : vector<16x1xf32> to vector<16x1x1xf32>
    %cst_5 = arith.constant 9.765625E-4 : f32
    %12 = vector.broadcast %cst_5 : f32 to vector<16x1x1xf32>
    %13 = arith.mulf %8, %12 : vector<16x1x1xf32>
    %14 = arith.mulf %8, %13 : vector<16x1x1xf32>
    %15 = arith.subf %11, %14 : vector<16x1x1xf32>
    %cst_6 = arith.constant 9.77517105E-4 : f32
    %16 = vector.broadcast %cst_6 : f32 to vector<16x1x1xf32>
    %17 = arith.mulf %15, %16 : vector<16x1x1xf32>
    %cst_7 = arith.constant 9.99999974E-6 : f32
    %18 = vector.broadcast %cst_7 : f32 to vector<16x1x1xf32>
    %19 = arith.addf %17, %18 : vector<16x1x1xf32>
    %20 = math.rsqrt %19 : vector<16x1x1xf32>
    %21 = vector.shape_cast %20 : vector<16x1x1xf32> to vector<16x1x1xf32>
    %22 = vector.broadcast %21 : vector<16x1x1xf32> to vector<16x4x1xf32>
    %23 = vector.shape_cast %22 : vector<16x4x1xf32> to vector<2x32x1xf32>
    %c0_8 = arith.constant 0 : index
    %c0_9 = arith.constant 0 : index
    %c0_10 = arith.constant 0 : index
    %24 = vector.load %arg3[%c0_8, %c0_9, %c0_10] : memref<3x32x1xf32, #tpu.memory_space<vmem>>, vector<1x32x1xf32>
    %25 = vector.shape_cast %24 : vector<1x32x1xf32> to vector<32x1xf32>
    %cst_11 = arith.constant 5.000000e-01 : f32
    %26 = vector.broadcast %cst_11 : f32 to vector<32x1xf32>
    %27 = arith.mulf %26, %25 : vector<32x1xf32>
    %c1 = arith.constant 1 : index
    %c0_12 = arith.constant 0 : index
    %c0_13 = arith.constant 0 : index
    %28 = vector.load %arg3[%c1, %c0_12, %c0_13] : memref<3x32x1xf32, #tpu.memory_space<vmem>>, vector<1x32x1xf32>
    %29 = vector.shape_cast %28 : vector<1x32x1xf32> to vector<32x1xf32>
    %cst_14 = arith.constant 5.000000e-01 : f32
    %30 = vector.broadcast %cst_14 : f32 to vector<32x1xf32>
    %31 = arith.mulf %30, %29 : vector<32x1xf32>
    %32 = vector.shape_cast %31 : vector<32x1xf32> to vector<1x32x1xf32>
    %33 = vector.broadcast %32 : vector<1x32x1xf32> to vector<2x32x1xf32>
    %34 = arith.mulf %33, %23 : vector<2x32x1xf32>
    %c2 = arith.constant 2 : index
    %c0_15 = arith.constant 0 : index
    %c0_16 = arith.constant 0 : index
    %35 = vector.load %arg3[%c2, %c0_15, %c0_16] : memref<3x32x1xf32, #tpu.memory_space<vmem>>, vector<1x32x1xf32>
    %36 = vector.shape_cast %35 : vector<1x32x1xf32> to vector<32x1xf32>
    %37 = vector.shape_cast %27 : vector<32x1xf32> to vector<1x32x1xf32>
    %38 = vector.broadcast %37 : vector<1x32x1xf32> to vector<2x32x256xf32>
    %39 = arith.mulf %38, %0 : vector<2x32x256xf32>
    %40 = math.tanh %39 : vector<2x32x256xf32>
    %cst_17 = arith.constant 1.000000e+00 : f32
    %41 = vector.broadcast %cst_17 : f32 to vector<2x32x256xf32>
    %42 = arith.addf %41, %40 : vector<2x32x256xf32>
    %43 = arith.mulf %0, %42 : vector<2x32x256xf32>
    %44 = vector.broadcast %34 : vector<2x32x1xf32> to vector<2x32x256xf32>
    %45 = arith.mulf %43, %44 : vector<2x32x256xf32>
    %46 = vector.shape_cast %36 : vector<32x1xf32> to vector<1x32x1xf32>
    %47 = vector.broadcast %46 : vector<1x32x1xf32> to vector<2x32x256xf32>
    %48 = arith.addf %45, %47 : vector<2x32x256xf32>
    %c0_18 = arith.constant 0 : index
    %c0_19 = arith.constant 0 : index
    %c0_20 = arith.constant 0 : index
    %49 = vector.load %arg4[%c0_18, %c0_19, %c0_20] : memref<2x32x256xf32, #tpu.memory_space<vmem>>, vector<2x32x256xf32>
    tpu.vector_store %arg4[%c0_18, %c0_19, %c0_20], %48 {strides = array<i32>} : memref<2x32x256xf32, #tpu.memory_space<vmem>>, vector<2x32x256xf32>,
    return
  }
  func.func @transform_0(%arg0: i32, %arg1: i32) -> (i32, i32, i32) {
    %c0_i32 = arith.constant 0 : i32
    %c0_i32_0 = arith.constant 0 : i32
    return %arg0, %arg1, %c0_i32 : i32, i32, i32
  }
  func.func @transform_1(%arg0: i32, %arg1: i32) -> (i32, i32, i32) {
    %c0_i32 = arith.constant 0 : i32
    %c0_i32_0 = arith.constant 0 : i32
    %c0_i32_1 = arith.constant 0 : i32
    return %c0_i32, %arg1, %c0_i32_0 : i32, i32, i32
  }
  func.func @transform_2(%arg0: i32, %arg1: i32) -> (i32, i32, i32) {
    %c0_i32 = arith.constant 0 : i32
    %c0_i32_0 = arith.constant 0 : i32
    return %arg0, %arg1, %c0_i32 : i32, i32, i32
  }
}

</mosaic_0001>

<bundles_post_ra>
// kernel: tpu_custom_call.1
= control target key start
LH: loop header
LB: loop body
LE: loop exit
PB: predicated region body
PF: predicated region fallthrough
CT: control target
= control target key end

     0   :  { %7 = vsyncpa [#allocation3], 0  ;;  %s1396_s0 = inlined_call_operand.hbm [shape: f32[2,32,256], index: 0, kind: input, shape index: {}]   ;;  %s1397_s1 = inlined_call_operand.vmem [shape: f32[3,32,1], index: 1, kind: input, shape index: {}]   ;;  %s1398_s2 = inlined_call_operand.hbm [shape: f32[2,32,256], index: 2, kind: output, shape index: {}]  }
   0x1   :  { %8 = vsyncpa [#allocation4], 0  ;;  %s1111_s9 = smov [#allocation2]  }
   0x2   :  { %s14_s10 = sshll.u32 %s1111_s9, 4  ;;  %s15_s10 = int_to_ptr.vmem [resolvable:$true] %s14_s10 }
   0x3   :  { %s1075_s11 = scalar_lea.vmem %s15_s10, 2048  ;;  %p1080_p1 = scmp.lt.s32.totalorder %s15_s10, %s15_s10 }
   0x4   :  { %p1076_p0 = scmp.ne.s32.totalorder %s15_s10, %s1075_s11  ;;  %p1081_p2 = scmp.lt.s32.totalorder %s1075_s11, %s1075_s11 }
   0x6   :  { %p1082_p3 = por %p1081_p2, %p1080_p1 }
   0x8   :  { %p1083_p4 = pnand %p1082_p3, %p1076_p0 }
   0xa   :  { %1086 = shalt.err (!%p1083_p4)
}
   0xb   :  { %s1112_s12 = smov 256   ;;  %s1113_s13 = smov 16  }
   0xc   :  { %20 = dma.hbm_to_vmem [thread:$0]  %s1396_s0, 2048, %s15_s10, [#allocation3], %s1112_s12, %s1112_s12, %s1113_s13  }
   0xd   :  { %1107 = dma.done.wait [#allocation3], 2048  }
   0xe   :  { %1108 = vsyncadd [#allocation3], 4294965248  ;;  %v30_v0 = vld [vmem:[#allocation2 + $0x20] sm:$0xff]  ;;  %v31_v1 = vld [vmem:[#allocation2 + $0x28] sm:$0xff]  ;;  %v1114_v50 = vmov 0   ;;  %v117_v61 = vlaneseq  ;;  %vm242_vm0 = vcmask 1043456  }
   0xf   :  { %v26_v2 = vld [vmem:[#allocation2] sm:$0xff]  ;;  %v48_v3 = vadd.f32 %v31_v1, %v30_v0  ;;  %v27_v4 = vld [vmem:[#allocation2 + $0x8] sm:$0xff]  ;;  %v32_v5 = vld [vmem:[#allocation2 + $0x30] sm:$0xff]  ;;  %v70_v32 = vmul.f32 %v30_v0, %v30_v0  ;;  %v71_v33 = vmul.f32 %v31_v1, %v31_v1  ;;  %986 = vset.pattern.permute.xlu1 %v1114_v50  ;;  %985 = vset.pattern.permute.xlu0 %v1114_v50  ;;  %v1115_v59 = vmov 839922192  }
  0x10   :  { %v33_v6 = vld [vmem:[#allocation2 + $0x38] sm:$0xff]  ;;  %v42_v7 = vadd.f32 %v27_v4, %v26_v2  ;;  %v1139_v8 = vld [vmem:[#allocation2 + $0x10] sm:$0xff]  ;;  %v34_v14 = vld [vmem:[#allocation2 + $0x40] sm:$0xff]  ;;  %v66_v26 = vmul.f32 %v26_v2, %v26_v2  ;;  %v67_v27 = vmul.f32 %v27_v4, %v27_v4  ;;  %v72_v29 = vmul.f32 %v32_v5, %v32_v5 }
  0x11   :  { %v1141_v9 = vld [vmem:[#allocation2 + $0x18] sm:$0xff]  ;;  %49 = vadd.xlane.f32.xlu1 %v48_v3  ;;  %v51_v10 = vadd.f32 %v33_v6, %v32_v5  ;;  %v1145_v12 = vld [vmem:[#allocation2 + $0x50] sm:$0xff]  ;;  %v35_v15 = vld [vmem:[#allocation2 + $0x48] sm:$0xff]  ;;  %v68_v23 = vmul.f32 %v1139_v8, %v1139_v8  ;;  %v73_v30 = vmul.f32 %v33_v6, %v33_v6  ;;  %v88_v37 = vadd.f32 %v71_v33, %v70_v32 }
  0x12   :  { %43 = vadd.xlane.f32.xlu0 %v42_v7  ;;  %v45_v11 = vadd.f32 %v1141_v9, %v1139_v8  ;;  %v1147_v13 = vld [vmem:[#allocation2 + $0x58] sm:$0xff]  ;;  %v54_v17 = vadd.f32 %v35_v15, %v34_v14  ;;  %v40_v18 = vld [vmem:[#allocation2 + $0x70] sm:$0xff]  ;;  %v38_v20 = vld [vmem:[#allocation2 + $0x60] sm:$0xff]  ;;  %v69_v24 = vmul.f32 %v1141_v9, %v1141_v9  ;;  %v82_v31 = vadd.f32 %v67_v27, %v66_v26 }
  0x13   :  { %v57_v16 = vadd.f32 %v1147_v13, %v1145_v12  ;;  %v41_v19 = vld [vmem:[#allocation2 + $0x78] sm:$0xff]  ;;  %v39_v21 = vld [vmem:[#allocation2 + $0x68] sm:$0xff]  ;;  %v91_v34 = vadd.f32 %v73_v30, %v72_v29  ;;  %v76_v35 = vmul.f32 %v1145_v12, %v1145_v12  ;;  %v77_v36 = vmul.f32 %v1147_v13, %v1147_v13  ;;  %v701_v51 = vld [vmem:[%s1397_s1 + $0x10] sm:$0xff] }
  0x14   :  { %v63_v22 = vadd.f32 %v41_v19, %v40_v18  ;;  %v60_v25 = vadd.f32 %v39_v21, %v38_v20  ;;  %v85_v28 = vadd.f32 %v69_v24, %v68_v23  ;;  %v74_v38 = vmul.f32 %v34_v14, %v34_v14  ;;  %v700_v48 = vld [vmem:[%s1397_s1 + $0x8] sm:$0xff]  ;;  %v702_v53 = vld [vmem:[%s1397_s1 + $0x18] sm:$0xff]  ;;  %v699_v54 = vld [vmem:[%s1397_s1] sm:$0xff] }
  0x15   :  { %52 = vadd.xlane.f32.xlu1 %v51_v10  ;;  %v75_v39 = vmul.f32 %v35_v15, %v35_v15  ;;  %v97_v40 = vadd.f32 %v77_v36, %v76_v35  ;;  %v80_v41 = vmul.f32 %v40_v18, %v40_v18  ;;  %v81_v42 = vmul.f32 %v41_v19, %v41_v19  ;;  %v974_v57 = vld [vmem:[%s1397_s1 + $0x40] sm:$0xff]  ;;  %v975_v58 = vld [vmem:[%s1397_s1 + $0x48] sm:$0xff] }
  0x16   :  { %46 = vadd.xlane.f32.xlu0 %v45_v11  ;;  %v78_v44 = vmul.f32 %v38_v20, %v38_v20  ;;  %v79_v45 = vmul.f32 %v39_v21, %v39_v21  ;;  %v704_v49 = vmul.f32 0.5, %v700_v48  ;;  %v705_v52 = vmul.f32 0.5, %v701_v51  ;;  %v970_v6 = vld [vmem:[%s1397_s1 + $0x20] sm:$0xff] }
  0x17   :  { %v94_v43 = vadd.f32 %v75_v39, %v74_v38  ;;  %v103_v46 = vadd.f32 %v81_v42, %v80_v41  ;;  %v706_v55 = vmul.f32 0.5, %v702_v53  ;;  %v703_v56 = vmul.f32 0.5, %v699_v54 }
  0x18   :  { %v100_v47 = vadd.f32 %v79_v45, %v78_v44  ;;  %v115_v60 = vunpack.c.l.s4 %v1115_v59  ;;  %v1116_v62 = vmov 1985246804   ;;  %v118_v1 = vshrl.u32 %v117_v61, 7 }
  0x19   :  { %58 = vadd.xlane.f32.xlu1 %v57_v16  ;;  %v122_v63 = vunpack.c.l.s4 %v1116_v62  ;;  %v1190_v18 = vmul.f32 0.5, %v970_v6 }
  0x1a   :  { %55 = vadd.xlane.f32.xlu0 %v54_v17  ;;  %v116_v0 = vunpack.c.0.s8 %v115_v60 }
  0x1b   :  { %v123_v2 = vunpack.c.0.s8 %v122_v63 }
  0x1c   :  { %v1177_v3 = vsub.s32 %v116_v0, %v118_v1 }
  0x1d   :  { %64 = vadd.xlane.f32.xlu1 %v63_v22  ;;  %v1179_v4 = vsub.s32 %v123_v2, %v118_v1  ;;  %v971_v1 = vld [vmem:[%s1397_s1 + $0x28] sm:$0xff] }
  0x1e   :  { %61 = vadd.xlane.f32.xlu0 %v60_v25 }
  0x21   :  { %86 = vadd.xlane.f32.xlu1 %v85_v28 }
  0x22   :  { %83 = vadd.xlane.f32.xlu0 %v82_v31 }
  0x25   :  { %92 = vadd.xlane.f32.xlu1 %v91_v34 }
  0x26   :  { %89 = vadd.xlane.f32.xlu0 %v88_v37 }
  0x29   :  { %98 = vadd.xlane.f32.xlu1 %v97_v40 }
  0x2a   :  { %95 = vadd.xlane.f32.xlu0 %v94_v43 }
  0x2d   :  { %104 = vadd.xlane.f32.xlu1 %v103_v46 }
  0x2e   :  { %101 = vadd.xlane.f32.xlu0 %v100_v47 }
  0x3e   :  { %768 = vperm.xlu1 %986, %v704_v49  }
  0x42   :  { %773 = vperm.xlu1 %986, %v705_v52  }
  0x44   :  { %763 = vperm.xlu0 %985, %v703_v56  }
  0x46   :  { %778 = vperm.xlu1 %986, %v706_v55  }
  0x48   :  { %908 = vperm.xlu0 %985, %v975_v58  }
  0x4a   :  { %903 = vperm.xlu1 %986, %v974_v57  }
  0x9a   :  { %v50_v5 = vpop.xlane.xlu1 %49 }
  0x9b   :  { %v148_v7 = vrot.slane %v50_v5, %v1177_v3  ;;  %v155_v10 = vrot.slane %v50_v5, %v1179_v4  ;;  %v44_v11 = vpop.xlane.xlu0 %43 }
  0x9c   :  { %v120_v14 = vrot.slane %v44_v11, %v1177_v3  ;;  %v127_v15 = vrot.slane %v44_v11, %v1179_v4 }
  0x9d   :  { %v271_v16 = vsel %vm242_vm0, %v148_v7, 0.0  ;;  %v278_v17 = vsel %vm242_vm0, %v155_v10, 0.0 }
  0x9e   :  { %v272_v19 = vrot.slane %v271_v16, 4  ;;  %v279_v20 = vrot.slane %v278_v17, 4  ;;  %v243_v21 = vsel %vm242_vm0, %v120_v14, 0.0  ;;  %v250_v22 = vsel %vm242_vm0, %v127_v15, 0.0  ;;  %v53_v23 = vpop.xlane.xlu1 %52 }
  0x9f   :  { %v244_v24 = vrot.slane %v243_v21, 4  ;;  %v251_v25 = vrot.slane %v250_v22, 4  ;;  %v162_v26 = vrot.slane %v53_v23, %v1177_v3  ;;  %v169_v27 = vrot.slane %v53_v23, %v1179_v4  ;;  %v47_v28 = vpop.xlane.xlu0 %46 }
  0xa0   :  { %v273_v29 = vadd.f32 %v272_v19, %v271_v16  ;;  %v280_v30 = vadd.f32 %v279_v20, %v278_v17  ;;  %v134_v31 = vrot.slane %v47_v28, %v1177_v3  ;;  %v141_v32 = vrot.slane %v47_v28, %v1179_v4 }
  0xa1   :  { %v245_v33 = vadd.f32 %v244_v24, %v243_v21  ;;  %v252_v34 = vadd.f32 %v251_v25, %v250_v22  ;;  %v285_v35 = vsel %vm242_vm0, %v162_v26, 0.0  ;;  %v292_v36 = vsel %vm242_vm0, %v169_v27, 0.0 }
  0xa2   :  { %v274_v37 = vrot.slane %v273_v29, 2  ;;  %v281_v38 = vrot.slane %v280_v30, 2  ;;  %v286_v39 = vrot.slane %v285_v35, 4  ;;  %v293_v40 = vrot.slane %v292_v36, 4  ;;  %v59_v10 = vpop.xlane.xlu1 %58 }
  0xa3   :  { %v246_v41 = vrot.slane %v245_v33, 2  ;;  %v253_v42 = vrot.slane %v252_v34, 2  ;;  %v257_v43 = vsel %vm242_vm0, %v134_v31, 0.0  ;;  %v264_v44 = vsel %vm242_vm0, %v141_v32, 0.0  ;;  %v56_v26 = vpop.xlane.xlu0 %55 }
  0xa4   :  { %v275_v45 = vadd.f32 %v274_v37, %v273_v29  ;;  %v282_v46 = vadd.f32 %v281_v38, %v280_v30  ;;  %v287_v47 = vadd.f32 %v286_v39, %v285_v35  ;;  %v294_v48 = vadd.f32 %v293_v40, %v292_v36 }
  0xa5   :  { %v247_v49 = vadd.f32 %v246_v41, %v245_v33  ;;  %v254_v50 = vadd.f32 %v253_v42, %v252_v34  ;;  %v258_v51 = vrot.slane %v257_v43, 4  ;;  %v265_v52 = vrot.slane %v264_v44, 4 }
  0xa6   :  { %v276_v53 = vrot.slane %v275_v45, 1  ;;  %v283_v54 = vrot.slane %v282_v46, 1  ;;  %v288_v55 = vrot.slane %v287_v47, 2  ;;  %v295_v56 = vrot.slane %v294_v48, 2  ;;  %v65_v39 = vpop.xlane.xlu1 %64 }
  0xa7   :  { %v248_v57 = vrot.slane %v247_v49, 1  ;;  %v255_v58 = vrot.slane %v254_v50, 1  ;;  %v259_v59 = vadd.f32 %v258_v51, %v257_v43  ;;  %v266_v60 = vadd.f32 %v265_v52, %v264_v44 }
  0xa8   :  { %v277_v61 = vadd.f32 %v276_v53, %v275_v45  ;;  %v284_v62 = vadd.f32 %v283_v54, %v282_v46  ;;  %v289_v63 = vadd.f32 %v288_v55, %v287_v47  ;;  %v296_v0 = vadd.f32 %v295_v56, %v294_v48  ;;  %v62_v56 = vpop.xlane.xlu0 %61 }
  0xa9   :  { %v249_v2 = vadd.f32 %v248_v57, %v247_v49  ;;  %v256_v5 = vadd.f32 %v255_v58, %v254_v50  ;;  %v260_v6 = vrot.slane %v259_v59, 2  ;;  %v267_v7 = vrot.slane %v266_v60, 2 }
  0xaa   :  { %v607_v11 = vmul.f32 0.0009765625, %v277_v61  ;;  %v608_v14 = vmul.f32 0.0009765625, %v284_v62  ;;  %v290_v15 = vrot.slane %v289_v63, 1  ;;  %v297_v16 = vrot.slane %v296_v0, 1 }
  0xab   :  { %v603_v17 = vmul.f32 0.0009765625, %v249_v2  ;;  %v261_v19 = vadd.f32 %v260_v6, %v259_v59  ;;  %v268_v20 = vadd.f32 %v267_v7, %v266_v60  ;;  %v1205_v21 = vmul.f32 0.5, %v971_v1 }
  0xac   :  { %v1207_v22 = vmul.f32 %v607_v11, %v277_v61  ;;  %v604_v23 = vmul.f32 0.0009765625, %v256_v5  ;;  %v291_v24 = vadd.f32 %v290_v15, %v289_v63  ;;  %v298_v25 = vadd.f32 %v297_v16, %v296_v0 }
  0xad   :  { %v1209_v27 = vmul.f32 %v608_v14, %v284_v62  ;;  %v1211_v28 = vmul.f32 %v603_v17, %v249_v2  ;;  %v262_v29 = vrot.slane %v261_v19, 1  ;;  %v269_v30 = vrot.slane %v268_v20, 1 }
  0xae   :  { %v609_v31 = vmul.f32 0.0009765625, %v291_v24  ;;  %v610_v32 = vmul.f32 0.0009765625, %v298_v25  ;;  %v190_v33 = vrot.slane %v59_v10, %v1177_v3  ;;  %v197_v34 = vrot.slane %v59_v10, %v1179_v4 }
  0xaf   :  { %v263_v35 = vadd.f32 %v262_v29, %v261_v19  ;;  %v1215_v36 = vadd.f32 %v269_v30, %v268_v20  ;;  %v176_v37 = vrot.slane %v56_v26, %v1177_v3  ;;  %v183_v38 = vrot.slane %v56_v26, %v1179_v4 }
  0xb0   :  { %v1219_v40 = vmul.f32 %v604_v23, %v256_v5  ;;  %v1221_v41 = vmul.f32 %v609_v31, %v291_v24  ;;  %v313_v42 = vsel %vm242_vm0, %v190_v33, 0.0  ;;  %v320_v43 = vsel %vm242_vm0, %v197_v34, 0.0 }
  0xb1   :  { %v1225_v44 = vmul.f32 %v610_v32, %v298_v25  ;;  %v605_v45 = vmul.f32 0.0009765625, %v263_v35  ;;  %v314_v46 = vrot.slane %v313_v42, 4  ;;  %v321_v47 = vrot.slane %v320_v43, 4 }
  0xb2   :  { %v299_v48 = vsel %vm242_vm0, %v176_v37, 0.0  ;;  %v306_v49 = vsel %vm242_vm0, %v183_v38, 0.0  ;;  %v218_v50 = vrot.slane %v65_v39, %v1177_v3  ;;  %v225_v51 = vrot.slane %v65_v39, %v1179_v4 }
  0xb3   :  { %v606_v52 = vmul.f32 0.0009765625, %v1215_v36  ;;  %v1232_v53 = vmul.f32 %v605_v45, %v263_v35  ;;  %v315_v54 = vadd.f32 %v314_v46, %v313_v42  ;;  %v322_v55 = vadd.f32 %v321_v47, %v320_v43  ;;  %v87_v43 = vpop.xlane.xlu1 %86 }
  0xb4   :  { %v300_v57 = vrot.slane %v299_v48, 4  ;;  %v307_v58 = vrot.slane %v306_v49, 4  ;;  %v341_v59 = vsel %vm242_vm0, %v218_v50, 0.0  ;;  %v348_v60 = vsel %vm242_vm0, %v225_v51, 0.0 }
  0xb5   :  { %v316_v61 = vrot.slane %v315_v54, 2  ;;  %v323_v62 = vrot.slane %v322_v55, 2  ;;  %v342_v63 = vrot.slane %v341_v59, 4  ;;  %v349_v0 = vrot.slane %v348_v60, 4 }
  0xb6   :  { %v301_v1 = vadd.f32 %v300_v57, %v299_v48  ;;  %v308_v2 = vadd.f32 %v307_v58, %v306_v49  ;;  %v204_v5 = vrot.slane %v62_v56, %v1177_v3  ;;  %v211_v6 = vrot.slane %v62_v56, %v1179_v4 }
  0xb7   :  { %v317_v7 = vadd.f32 %v316_v61, %v315_v54  ;;  %v324_v10 = vadd.f32 %v323_v62, %v322_v55  ;;  %v343_v11 = vadd.f32 %v342_v63, %v341_v59  ;;  %v350_v14 = vadd.f32 %v349_v0, %v348_v60 }
  0xb8   :  { %v302_v15 = vrot.slane %v301_v1, 2  ;;  %v309_v16 = vrot.slane %v308_v2, 2  ;;  %v327_v17 = vsel %vm242_vm0, %v204_v5, 0.0  ;;  %v334_v19 = vsel %vm242_vm0, %v211_v6, 0.0  ;;  %v84_v5 = vpop.xlane.xlu0 %83 }
  0xb9   :  { %v318_v20 = vrot.slane %v317_v7, 1  ;;  %v325_v23 = vrot.slane %v324_v10, 1  ;;  %v344_v24 = vrot.slane %v343_v11, 2  ;;  %v351_v25 = vrot.slane %v350_v14, 2 }
  0xba   :  { %v303_v26 = vadd.f32 %v302_v15, %v301_v1  ;;  %v310_v29 = vadd.f32 %v309_v16, %v308_v2  ;;  %v328_v30 = vrot.slane %v327_v17, 4  ;;  %v335_v31 = vrot.slane %v334_v19, 4 }
  0xbb   :  { %v319_v32 = vadd.f32 %v318_v20, %v317_v7  ;;  %v326_v33 = vadd.f32 %v325_v23, %v324_v10  ;;  %v345_v34 = vadd.f32 %v344_v24, %v343_v11  ;;  %v352_v35 = vadd.f32 %v351_v25, %v350_v14  ;;  %v93_v10 = vpop.xlane.xlu1 %92 }
  0xbc   :  { %v304_v37 = vrot.slane %v303_v26, 1  ;;  %v311_v38 = vrot.slane %v310_v29, 1  ;;  %v329_v39 = vadd.f32 %v328_v30, %v327_v17  ;;  %v336_v42 = vadd.f32 %v335_v31, %v334_v19 }
  0xbd   :  { %v613_v45 = vmul.f32 0.0009765625, %v319_v32  ;;  %v614_v46 = vmul.f32 0.0009765625, %v326_v33  ;;  %v346_v47 = vrot.slane %v345_v34, 1  ;;  %v353_v48 = vrot.slane %v352_v35, 1 }
  0xbe   :  { %v305_v49 = vadd.f32 %v304_v37, %v303_v26  ;;  %v312_v50 = vadd.f32 %v311_v38, %v310_v29  ;;  %v330_v51 = vrot.slane %v329_v39, 2  ;;  %v337_v54 = vrot.slane %v336_v42, 2 }
  0xbf   :  { %v1241_v55 = vmul.f32 %v606_v52, %v1215_v36  ;;  %v1243_v56 = vmul.f32 %v613_v45, %v319_v32  ;;  %v347_v57 = vadd.f32 %v346_v47, %v345_v34  ;;  %v354_v58 = vadd.f32 %v353_v48, %v352_v35 }
  0xc0   :  { %v611_v59 = vmul.f32 0.0009765625, %v305_v49  ;;  %v612_v60 = vmul.f32 0.0009765625, %v312_v50  ;;  %v331_v61 = vadd.f32 %v330_v51, %v329_v39  ;;  %v338_v62 = vadd.f32 %v337_v54, %v336_v42  ;;  %v90_v39 = vpop.xlane.xlu0 %89 }
  0xc1   :  { %v1245_v63 = vmul.f32 %v614_v46, %v326_v33  ;;  %v617_v0 = vmul.f32 0.0009765625, %v347_v57  ;;  %v383_v1 = vrot.slane %v87_v43, %v1177_v3  ;;  %v390_v2 = vrot.slane %v87_v43, %v1179_v4 }
  0xc2   :  { %v1249_v6 = vmul.f32 %v611_v59, %v305_v49  ;;  %v618_v36 = vmul.f32 0.0009765625, %v354_v58  ;;  %v332_v52 = vrot.slane %v331_v61, 1  ;;  %v339_v7 = vrot.slane %v338_v62, 1 }
  0xc3   :  { %v1251_v11 = vmul.f32 %v612_v60, %v312_v50  ;;  %v1253_v14 = vmul.f32 %v617_v0, %v347_v57  ;;  %v505_v15 = vsel %vm242_vm0, %v383_v1, 0.0  ;;  %v512_v16 = vsel %vm242_vm0, %v390_v2, 0.0 }
  0xc4   :  { %v333_v17 = vadd.f32 %v332_v52, %v331_v61  ;;  %v1257_v19 = vadd.f32 %v339_v7, %v338_v62  ;;  %v506_v20 = vrot.slane %v505_v15, 4  ;;  %v513_v23 = vrot.slane %v512_v16, 4 }
  0xc5   :  { %v369_v24 = vrot.slane %v84_v5, %v1177_v3  ;;  %v376_v25 = vrot.slane %v84_v5, %v1179_v4  ;;  %v411_v26 = vrot.slane %v93_v10, %v1177_v3  ;;  %v418_v29 = vrot.slane %v93_v10, %v1179_v4 }
  0xc6   :  { %v1263_v30 = vmul.f32 %v618_v36, %v354_v58  ;;  %v615_v31 = vmul.f32 0.0009765625, %v333_v17  ;;  %v507_v32 = vadd.f32 %v506_v20, %v505_v15  ;;  %v514_v33 = vadd.f32 %v513_v23, %v512_v16 }
  0xc7   :  { %v491_v34 = vsel %vm242_vm0, %v369_v24, 0.0  ;;  %v498_v35 = vsel %vm242_vm0, %v376_v25, 0.0  ;;  %v533_v37 = vsel %vm242_vm0, %v411_v26, 0.0  ;;  %v540_v38 = vsel %vm242_vm0, %v418_v29, 0.0 }
  0xc8   :  { %v1270_v42 = vmul.f32 0.0009765625, %v1257_v19  ;;  %v1272_v43 = vmul.f32 %v615_v31, %v333_v17  ;;  %v508_v45 = vrot.slane %v507_v32, 2  ;;  %v515_v46 = vrot.slane %v514_v33, 2 }
  0xc9   :  { %v492_v47 = vrot.slane %v491_v34, 4  ;;  %v499_v48 = vrot.slane %v498_v35, 4  ;;  %v534_v49 = vrot.slane %v533_v37, 4  ;;  %v541_v50 = vrot.slane %v540_v38, 4 }
  0xca   :  { %v509_v51 = vadd.f32 %v508_v45, %v507_v32  ;;  %v516_v54 = vadd.f32 %v515_v46, %v514_v33  ;;  %v397_v57 = vrot.slane %v90_v39, %v1177_v3  ;;  %v404_v58 = vrot.slane %v90_v39, %v1179_v4 }
  0xcb   :  { %v493_v59 = vadd.f32 %v492_v47, %v491_v34  ;;  %v500_v60 = vadd.f32 %v499_v48, %v498_v35  ;;  %v535_v61 = vadd.f32 %v534_v49, %v533_v37  ;;  %v542_v62 = vadd.f32 %v541_v50, %v540_v38 }
  0xcc   :  { %v510_v0 = vrot.slane %v509_v51, 1  ;;  %v517_v1 = vrot.slane %v516_v54, 1  ;;  %v519_v2 = vsel %vm242_vm0, %v397_v57, 0.0  ;;  %v526_v5 = vsel %vm242_vm0, %v404_v58, 0.0 }
  0xcd   :  { %v494_v36 = vrot.slane %v493_v59, 2  ;;  %v501_v52 = vrot.slane %v500_v60, 2  ;;  %v536_v7 = vrot.slane %v535_v61, 2  ;;  %v543_v10 = vrot.slane %v542_v62, 2 }
  0xce   :  { %v511_v15 = vadd.f32 %v510_v0, %v509_v51  ;;  %v518_v16 = vadd.f32 %v517_v1, %v516_v54  ;;  %v520_v17 = vrot.slane %v519_v2, 4  ;;  %v527_v20 = vrot.slane %v526_v5, 4  ;;  %v99_v54 = vpop.xlane.xlu1 %98 }
  0xcf   :  { %v495_v23 = vadd.f32 %v494_v36, %v493_v59  ;;  %v502_v24 = vadd.f32 %v501_v52, %v500_v60  ;;  %v537_v25 = vadd.f32 %v536_v7, %v535_v61  ;;  %v544_v26 = vadd.f32 %v543_v10, %v542_v62 }
  0xd0   :  { %v637_v29 = vsub.f32 %v511_v15, %v1232_v53  ;;  %v638_v31 = vsub.f32 %v518_v16, %v1241_v55  ;;  %v521_v32 = vadd.f32 %v520_v17, %v519_v2  ;;  %v528_v33 = vadd.f32 %v527_v20, %v526_v5  ;;  %v96_v5 = vpop.xlane.xlu0 %95 }
  0xd1   :  { %v496_v34 = vrot.slane %v495_v23, 1  ;;  %v503_v35 = vrot.slane %v502_v24, 1  ;;  %v538_v37 = vrot.slane %v537_v25, 1  ;;  %v545_v38 = vrot.slane %v544_v26, 1 }
  0xd2   :  { %v653_v39 = vmul.f32 0.0009775171, %v637_v29  ;;  %v654_v45 = vmul.f32 0.0009775171, %v638_v31  ;;  %v522_v46 = vrot.slane %v521_v32, 2  ;;  %v529_v47 = vrot.slane %v528_v33, 2 }
  0xd3   :  { %v497_v48 = vadd.f32 %v496_v34, %v495_v23  ;;  %v504_v49 = vadd.f32 %v503_v35, %v502_v24  ;;  %v539_v50 = vadd.f32 %v538_v37, %v537_v25  ;;  %v546_v51 = vadd.f32 %v545_v38, %v544_v26  ;;  %v105_v35 = vpop.xlane.xlu1 %104 }
  0xd4   :  { %v669_v57 = vadd.f32 1e-05, %v653_v39  ;;  %v670_v58 = vadd.f32 1e-05, %v654_v45  ;;  %v523_v53 = vadd.f32 %v522_v46, %v521_v32  ;;  %v530_v59 = vadd.f32 %v529_v47, %v528_v33 }
  0xd5   :  { %v635_v55 = vsub.f32 %v497_v48, %v1211_v28  ;;  %v636_v60 = vsub.f32 %v504_v49, %v1219_v40  ;;  %v641_v61 = vsub.f32 %v539_v50, %v1221_v41  ;;  %v642_v62 = vsub.f32 %v546_v51, %v1225_v44 }
  0xd6   :  { %987 = vrsqrt.f32 %v669_v57  ;;  %v524_v0 = vrot.slane %v523_v53, 1  ;;  %v531_v1 = vrot.slane %v530_v59, 1  ;;  %v439_v2 = vrot.slane %v99_v54, %v1177_v3 }
  0xd7   :  { %989 = vrsqrt.f32 %v670_v58  ;;  %v651_v36 = vmul.f32 0.0009775171, %v635_v55  ;;  %v652_v52 = vmul.f32 0.0009775171, %v636_v60  ;;  %v657_v7 = vmul.f32 0.0009775171, %v641_v61 }
  0xd8   :  { %v658_v10 = vmul.f32 0.0009775171, %v642_v62  ;;  %v525_v15 = vadd.f32 %v524_v0, %v523_v53  ;;  %v532_v16 = vadd.f32 %v531_v1, %v530_v59  ;;  %v446_v28 = vrot.slane %v99_v54, %v1179_v4 }
  0xd9   :  { %v667_v40 = vadd.f32 1e-05, %v651_v36  ;;  %v668_v17 = vadd.f32 1e-05, %v652_v52  ;;  %v673_v41 = vadd.f32 1e-05, %v657_v7  ;;  %v425_v44 = vrot.slane %v96_v5, %v1177_v3 }
  0xda   :  { %v674_v20 = vadd.f32 1e-05, %v658_v10  ;;  %v639_v23 = vsub.f32 %v525_v15, %v1207_v22  ;;  %v640_v24 = vsub.f32 %v532_v16, %v1209_v27  ;;  %v561_v25 = vsel %vm242_vm0, %v439_v2, 0.0  ;;  %v102_v27 = vpop.xlane.xlu0 %101 }
  0xdb   :  { %991 = vrsqrt.f32 %v667_v40  ;;  %v562_v26 = vrot.slane %v561_v25, 4  ;;  %v568_v29 = vsel %vm242_vm0, %v446_v28, 0.0  ;;  %v432_v31 = vrot.slane %v96_v5, %v1179_v4 }
  0xdc   :  { %993 = vrsqrt.f32 %v668_v17  ;;  %v655_v32 = vmul.f32 0.0009775171, %v639_v23  ;;  %v656_v33 = vmul.f32 0.0009775171, %v640_v24  ;;  %v569_v34 = vrot.slane %v568_v29, 4 }
  0xdd   :  { %995 = vrsqrt.f32 %v673_v41  ;;  %v563_v37 = vadd.f32 %v562_v26, %v561_v25  ;;  %v547_v38 = vsel %vm242_vm0, %v425_v44, 0.0  ;;  %v554_v22 = vsel %vm242_vm0, %v432_v31, 0.0 }
  0xde   :  { %997 = vrsqrt.f32 %v674_v20  ;;  %v671_v39 = vadd.f32 1e-05, %v655_v32  ;;  %v672_v45 = vadd.f32 1e-05, %v656_v33  ;;  %v570_v46 = vadd.f32 %v569_v34, %v568_v29 }
  0xdf   :  { %v564_v47 = vrot.slane %v563_v37, 2  ;;  %v548_v48 = vrot.slane %v547_v38, 4  ;;  %v555_v49 = vrot.slane %v554_v22, 4  ;;  %v467_v50 = vrot.slane %v105_v35, %v1177_v3 }
  0xe0   :  { %999 = vrsqrt.f32 %v671_v39  ;;  %v571_v51 = vrot.slane %v570_v46, 2  ;;  %v474_v54 = vrot.slane %v105_v35, %v1179_v4  ;;  %v453_v57 = vrot.slane %v102_v27, %v1177_v3 }
  0xe1   :  { %1001 = vrsqrt.f32 %v672_v45  ;;  %v565_v58 = vadd.f32 %v564_v47, %v563_v37  ;;  %v549_v53 = vadd.f32 %v548_v48, %v547_v38  ;;  %v556_v59 = vadd.f32 %v555_v49, %v554_v22 }
  0xe2   :  { %v572_v55 = vadd.f32 %v571_v51, %v570_v46  ;;  %v589_v60 = vsel %vm242_vm0, %v467_v50, 0.0  ;;  %v596_v61 = vsel %vm242_vm0, %v474_v54, 0.0  ;;  %v460_v62 = vrot.slane %v102_v27, %v1179_v4 }
  0xe3   :  { %v1300_v0 = vpop.eup %987  ;;  %v566_v1 = vrot.slane %v565_v58, 1  ;;  %v550_v2 = vrot.slane %v549_v53, 2  ;;  %v557_v5 = vrot.slane %v556_v59, 2  ;;  %v590_v36 = vrot.slane %v589_v60, 4 }
  0xe4   :  { %v1302_v52 = vpop.eup %989  ;;  %v573_v3 = vrot.slane %v572_v55, 1  ;;  %v597_v7 = vrot.slane %v596_v61, 4  ;;  %v575_v10 = vsel %vm242_vm0, %v453_v57, 0.0  ;;  %v582_v15 = vsel %vm242_vm0, %v460_v62, 0.0 }
  0xe5   :  { %v567_v16 = vadd.f32 %v566_v1, %v565_v58  ;;  %v551_v28 = vadd.f32 %v550_v2, %v549_v53  ;;  %v558_v40 = vadd.f32 %v557_v5, %v556_v59  ;;  %v591_v17 = vadd.f32 %v590_v36, %v589_v60 }
  0xe6   :  { %v574_v41 = vadd.f32 %v573_v3, %v572_v55  ;;  %v598_v4 = vadd.f32 %v597_v7, %v596_v61  ;;  %v576_v44 = vrot.slane %v575_v10, 4  ;;  %v583_v20 = vrot.slane %v582_v15, 4 }
  0xe7   :  { %v645_v23 = vsub.f32 %v567_v16, %v1243_v56  ;;  %v552_v24 = vrot.slane %v551_v28, 1  ;;  %v559_v25 = vrot.slane %v558_v40, 1  ;;  %v592_v26 = vrot.slane %v591_v17, 2 }
  0xe8   :  { %v992_v29 = vpop.eup %991  ;;  %v646_v31 = vsub.f32 %v574_v41, %v1245_v63  ;;  %v599_v32 = vrot.slane %v598_v4, 2  ;;  %v577_v33 = vadd.f32 %v576_v44, %v575_v10  ;;  %v584_v34 = vadd.f32 %v583_v20, %v582_v15 }
  0xe9   :  { %v994_v35 = vpop.eup %993  ;;  %v661_v37 = vmul.f32 0.0009775171, %v645_v23  ;;  %v553_v38 = vadd.f32 %v552_v24, %v551_v28  ;;  %v560_v22 = vadd.f32 %v559_v25, %v558_v40  ;;  %v593_v27 = vadd.f32 %v592_v26, %v591_v17 }
  0xea   :  { %v1308_v39 = vpop.eup %995  ;;  %v662_v45 = vmul.f32 0.0009775171, %v646_v31  ;;  %v600_v46 = vadd.f32 %v599_v32, %v598_v4  ;;  %v578_v47 = vrot.slane %v577_v33, 2  ;;  %v585_v56 = vrot.slane %v584_v34, 2 }
  0xeb   :  { %v998_v48 = vpop.eup %997  ;;  %v677_v49 = vadd.f32 1e-05, %v661_v37  ;;  %v643_v50 = vsub.f32 %v553_v38, %v1249_v6  ;;  %v644_v63 = vsub.f32 %v560_v22, %v1251_v11  ;;  %v594_v51 = vrot.slane %v593_v27, 1 }
  0xec   :  { %v678_v54 = vadd.f32 1e-05, %v662_v45  ;;  %v601_v57 = vrot.slane %v600_v46, 1  ;;  %v579_v58 = vadd.f32 %v578_v47, %v577_v33  ;;  %v586_v53 = vadd.f32 %v585_v56, %v584_v34 }
  0xed   :  { %v1000_v59 = vpop.eup %999  ;;  %1003 = vrsqrt.f32 %v677_v49  ;;  %v659_v55 = vmul.f32 0.0009775171, %v643_v50  ;;  %v660_v60 = vmul.f32 0.0009775171, %v644_v63  ;;  %v595_v61 = vadd.f32 %v594_v51, %v593_v27  ;;  %v977_v63 = vld [vmem:[%s1397_s1 + $0x58] sm:$0xff]  ;;  %v976_v51 = vld [vmem:[%s1397_s1 + $0x50] sm:$0xff] }
  0xee   :  { %v1002_v62 = vpop.eup %1001  ;;  %1005 = vrsqrt.f32 %v678_v54  ;;  %v602_v1 = vadd.f32 %v601_v57, %v600_v46  ;;  %v580_v2 = vrot.slane %v579_v58, 1  ;;  %v587_v5 = vrot.slane %v586_v53, 1  ;;  %v1051_v54 = vld [vmem:[#allocation2] sm:$0xff] }
  0xef   :  { %v675_v36 = vadd.f32 1e-05, %v659_v55  ;;  %v676_v3 = vadd.f32 1e-05, %v660_v60  ;;  %v649_v6 = vsub.f32 %v595_v61, %v1253_v14  ;;  %v732_v11 = vcombine.low %v992_v29, %v994_v35 }
  0xf0   :  { %v632_v7 = vmul.f32 %v1270_v42, %v1257_v19  ;;  %v650_v10 = vsub.f32 %v602_v1, %v1263_v30  ;;  %v581_v15 = vadd.f32 %v580_v2, %v579_v58  ;;  %v588_v16 = vadd.f32 %v587_v5, %v586_v53  ;;  %v972_v19 = vld [vmem:[%s1397_s1 + $0x30] sm:$0xff]  ;;  %v1052_v58 = vld [vmem:[#allocation2 + $0x8] sm:$0xff]  ;;  %v1340_v5 = vld [vmem:[#allocation2 + $0x40] sm:$0xff] }
  0xf1   :  { %1007 = vrsqrt.f32 %v675_v36  ;;  %v665_v28 = vmul.f32 0.0009775171, %v649_v6  ;;  %v748_v40 = vmul.f32 %v732_v11, %v1190_v18  ;;  %v733_v17 = vcombine.low %v1300_v0, %v1302_v52  ;;  %v1343_v11 = vld [vmem:[#allocation2 + $0x48] sm:$0xff] }
  0xf2   :  { %1009 = vrsqrt.f32 %v676_v3  ;;  %v666_v41 = vmul.f32 0.0009775171, %v650_v10  ;;  %v647_v4 = vsub.f32 %v581_v15, %v1272_v43  ;;  %v648_v14 = vsub.f32 %v588_v16, %v632_v7  ;;  %v973_v43 = vld [vmem:[%s1397_s1 + $0x38] sm:$0xff]  ;;  %v1349_v16 = vld [vmem:[#allocation2 + $0x30] sm:$0xff]  ;;  %s1117_s1 = smov [#allocation5]  }
  0xf3   :  { %v681_v42 = vadd.f32 1e-05, %v665_v28  ;;  %847 = vperm.xlu1 %986, %v748_v40   ;;  %v749_v23 = vmul.f32 %v733_v17, %v1205_v21  ;;  %v714_v24 = vmul.f32 0.5, %v972_v19  ;;  %v734_v25 = vcombine.low %v1000_v59, %v1002_v62  ;;  %v769_v59 = vpop.permute.xlu1 %768  ;;  %v1352_v40 = vld [vmem:[#allocation2 + $0x38] sm:$0xff]  ;;  %s958_s11 = sshll.u32 %s1117_s1, 4  ;;  %s959_s11 = int_to_ptr.vmem [resolvable:$true] %s958_s11 }
  0xf4   :  { %v682_v30 = vadd.f32 1e-05, %v666_v41  ;;  %v663_v44 = vmul.f32 0.0009775171, %v647_v4  ;;  %v664_v20 = vmul.f32 0.0009775171, %v648_v14  ;;  %v735_v31 = vcombine.low %v1308_v39, %v998_v48  ;;  %p1092_p6 = scmp.lt.s32.totalorder %s959_s11, %s959_s11 }
  0xf5   :  { %1011 = vrsqrt.f32 %v681_v42  ;;  %v750_v26 = vmul.f32 %v734_v25, %v714_v24  ;;  %v715_v29 = vmul.f32 0.5, %v973_v43  ;;  %v783_v55 = vmul.f32 %v769_v59, %v1139_v8  ;;  %v1355_v41 = vld [vmem:[#allocation2 + $0x70] sm:$0xff]  ;;  %v1369_v43 = vld [vmem:[#allocation2 + $0x68] sm:$0xff]  ;;  %s1087_s14 = scalar_lea.vmem %s959_s11, 2048 }
  0xf6   :  { %1013 = vrsqrt.f32 %v682_v30  ;;  %v679_v0 = vadd.f32 1e-05, %v663_v44  ;;  %v680_v52 = vadd.f32 1e-05, %v664_v20  ;;  %v784_v60 = vmul.f32 %v769_v59, %v1141_v9  ;;  %v1346_v9 = vld [vmem:[#allocation2 + $0x20] sm:$0xff]  ;;  %v1360_v20 = vld [vmem:[#allocation2 + $0x78] sm:$0xff]  ;;  %p1088_p5 = scmp.ne.s32.totalorder %s959_s11, %s1087_s14  ;;  %p1093_p7 = scmp.lt.s32.totalorder %s1087_s14, %s1087_s14 }
  0xf7   :  { %852 = vperm.xlu1 %986, %v749_v23   ;;  %v751_v35 = vmul.f32 %v735_v31, %v715_v29  ;;  %v774_v61 = vpop.permute.xlu1 %773  ;;  %v791_v62 = vmul.f32 %v769_v59, %v1145_v12  ;;  %v792_v1 = vmul.f32 %v769_v59, %v1147_v13 }
  0xf8   :  { %1015 = vrsqrt.f32 %v679_v0  ;;  %v785_v7 = vmul.f32 %v1346_v9, %v774_v61  ;;  %v1366_v0 = vld [vmem:[#allocation2 + $0x60] sm:$0xff]  ;;  %p1094_p8 = por %p1093_p7, %p1092_p6 }
  0xf9   :  { %1017 = vrsqrt.f32 %v680_v52  ;;  %v793_v52 = vmul.f32 %v1366_v0, %v774_v61 }
  0xfa   :  { %v1004_v32 = vpop.eup %1003  ;;  %p1095_p9 = pnand %p1094_p8, %p1088_p5 }
  0xfb   :  { %v1006_v33 = vpop.eup %1005  ;;  %857 = vperm.xlu1 %986, %v750_v26   ;;  %v779_v6 = vpop.permute.xlu1 %778  ;;  %v794_v26 = vmul.f32 %v1369_v43, %v774_v61 }
  0xfc   :  { %v737_v34 = vcombine.low %v1004_v32, %v1006_v33  ;;  %v787_v28 = vmul.f32 %v1349_v16, %v779_v6  ;;  %v788_v17 = vmul.f32 %v1352_v40, %v779_v6  ;;  %v795_v4 = vmul.f32 %v1355_v41, %v779_v6  ;;  %v1063_v33 = vld [vmem:[#allocation2 + $0x10] sm:$0xff] }
  0xfd   :  { %v796_v23 = vmul.f32 %v1360_v20, %v779_v6 }
  0xfe   :  { %v1008_v37 = vpop.eup %1007  ;;  %v753_v38 = vmul.f32 %v737_v34, %v1205_v21 }
  0xff   :  { %v1010_v22 = vpop.eup %1009  ;;  %862 = vperm.xlu1 %986, %v751_v35   ;;  %v1358_v14 = vpop.permute.xlu1 %903  ;;  %v1064_v35 = vld [vmem:[#allocation2 + $0x18] sm:$0xff] }
 0x100   :  { %872 = vperm.xlu0 %985, %v753_v38   ;;  %v736_v27 = vcombine.low %v1008_v37, %v1010_v22 }
 0x102   :  { %v1012_v45 = vpop.eup %1011  ;;  %v752_v46 = vmul.f32 %v736_v27, %v1190_v18  ;;  %v764_v18 = vpop.permute.xlu0 %763 }
 0x103   :  { %v1014_v47 = vpop.eup %1013  ;;  %v781_v57 = vmul.f32 %v1051_v54, %v764_v18  ;;  %v782_v53 = vmul.f32 %v1052_v58, %v764_v18  ;;  %v789_v36 = vmul.f32 %v1340_v5, %v764_v18  ;;  %v790_v8 = vmul.f32 %v1343_v11, %v764_v18 }
 0x104   :  { %v739_v56 = vcombine.low %v1012_v45, %v1014_v47  ;;  %867 = vperm.xlu1 %986, %v752_v46  }
 0x105   :  { %v1016_v49 = vpop.eup %1015  ;;  %1019 = vtanh.f32 %v781_v57 }
 0x106   :  { %v1018_v39 = vpop.eup %1017  ;;  %v755_v48 = vmul.f32 %v739_v56, %v715_v29  ;;  %1021 = vtanh.f32 %v782_v53 }
 0x107   :  { %v738_v50 = vcombine.low %v1016_v49, %v1018_v39  ;;  %1023 = vtanh.f32 %v783_v55  ;;  %v909_v39 = vpop.permute.xlu0 %908  ;;  %v1065_v55 = vld [vmem:[#allocation2 + $0x50] sm:$0xff] }
 0x108   :  { %882 = vperm.xlu0 %985, %v755_v48   ;;  %1025 = vtanh.f32 %v784_v60 }
 0x109   :  { %v754_v21 = vmul.f32 %v738_v50, %v714_v24  ;;  %1027 = vtanh.f32 %v791_v62  ;;  %v1363_v24 = vld [vmem:[#allocation2 + $0x28] sm:$0xff] }
 0x10a   :  { %1029 = vtanh.f32 %v792_v1  ;;  %v786_v25 = vmul.f32 %v1363_v24, %v774_v61  ;;  %v1066_v61 = vld [vmem:[#allocation2 + $0x58] sm:$0xff] }
 0x10b   :  { %877 = vperm.xlu1 %986, %v754_v21   ;;  %1031 = vtanh.f32 %v789_v36 }
 0x10c   :  { %918 = vperm.xlu0 %985, %v977_v63   ;;  %1033 = vtanh.f32 %v790_v8 }
 0x10d   :  { %1035 = vtanh.f32 %v785_v7 }
 0x10e   :  { %1037 = vtanh.f32 %v787_v28 }
 0x10f   :  { %913 = vperm.xlu1 %986, %v976_v51   ;;  %1039 = vtanh.f32 %v788_v17 }
 0x110   :  { %1041 = vtanh.f32 %v795_v4 }
 0x111   :  { %1043 = vtanh.f32 %v796_v23 }
 0x112   :  { %v1020_v2 = vpop.eup %1019  ;;  %1045 = vtanh.f32 %v786_v25 }
 0x113   :  { %v1022_v3 = vpop.eup %1021  ;;  %v813_v13 = vadd.f32 1.0, %v1020_v2  ;;  %1047 = vtanh.f32 %v793_v52 }
 0x114   :  { %v1024_v12 = vpop.eup %1023  ;;  %v814_v10 = vadd.f32 1.0, %v1022_v3  ;;  %1049 = vtanh.f32 %v794_v26 }
 0x115   :  { %v1026_v15 = vpop.eup %1025  ;;  %v829_v19 = vmul.f32 %v1051_v54, %v813_v13  ;;  %v815_v30 = vadd.f32 1.0, %v1024_v12 }
 0x116   :  { %v830_v42 = vmul.f32 %v1052_v58, %v814_v10  ;;  %v816_v44 = vadd.f32 1.0, %v1026_v15  ;;  %v1028_v27 = vpop.eup %1027 }
 0x117   :  { %v831_v34 = vmul.f32 %v1063_v33, %v815_v30  ;;  %v1030_v46 = vpop.eup %1029  ;;  %v823_v51 = vadd.f32 1.0, %v1028_v27 }
 0x118   :  { %v832_v37 = vmul.f32 %v1064_v35, %v816_v44  ;;  %v1032_v49 = vpop.eup %1031  ;;  %v824_v18 = vadd.f32 1.0, %v1030_v46 }
 0x119   :  { %v1034_v48 = vpop.eup %1033  ;;  %v821_v57 = vadd.f32 1.0, %v1032_v49  ;;  %v839_v60 = vmul.f32 %v1065_v55, %v823_v51 }
 0x11a   :  { %v1036_v54 = vpop.eup %1035  ;;  %v822_v58 = vadd.f32 1.0, %v1034_v48  ;;  %v840_v62 = vmul.f32 %v1066_v61, %v824_v18 }
 0x11b   :  { %v1038_v53 = vpop.eup %1037  ;;  %v837_v8 = vmul.f32 %v1340_v5, %v821_v57 }
 0x11c   :  { %v1040_v59 = vpop.eup %1039  ;;  %v838_v7 = vmul.f32 %v1343_v11, %v822_v58  ;;  %v819_v17 = vadd.f32 1.0, %v1038_v53  ;;  %v817_v11 = vadd.f32 1.0, %v1036_v54 }
 0x11d   :  { %v1042_v2 = vpop.eup %1041  ;;  %v820_v4 = vadd.f32 1.0, %v1040_v59 }
 0x11e   :  { %v1044_v12 = vpop.eup %1043  ;;  %v827_v30 = vadd.f32 1.0, %v1042_v2  ;;  %v835_v33 = vmul.f32 %v1349_v16, %v819_v17  ;;  %v833_v46 = vmul.f32 %v1346_v9, %v817_v11 }
 0x11f   :  { %v1046_v13 = vpop.eup %1045  ;;  %v828_v44 = vadd.f32 1.0, %v1044_v12 }
 0x120   :  { %v1048_v28 = vpop.eup %1047  ;;  %v818_v26 = vadd.f32 1.0, %v1046_v13  ;;  %v843_v35 = vmul.f32 %v1355_v41, %v827_v30 }
 0x16e   :  { %v848_v29 = vpop.permute.xlu1 %847 }
 0x16f   :  { %v885_v31 = vmul.f32 %v848_v29, %v829_v19  ;;  %v886_v32 = vmul.f32 %v848_v29, %v830_v42  ;;  %v1050_v42 = vpop.eup %1049 }
 0x171   :  { %v921_v38 = vadd.f32 %v1358_v14, %v885_v31  ;;  %v922_v22 = vadd.f32 %v1358_v14, %v886_v32  ;;  %v825_v31 = vadd.f32 1.0, %v1048_v28  ;;  %v826_v32 = vadd.f32 1.0, %v1050_v42 }
 0x172   :  { %v853_v45 = vpop.permute.xlu1 %852 }
 0x173   :  { %937 = vst [vmem:[#allocation5] sm:$0xff] %v921_v38  ;;  %938 = vst [vmem:[#allocation5 + $0x8] sm:$0xff] %v922_v22  ;;  %v887_v47 = vmul.f32 %v853_v45, %v831_v34  ;;  %v888_v56 = vmul.f32 %v853_v45, %v832_v37  ;;  %v836_v34 = vmul.f32 %v1352_v40, %v820_v4 }
 0x174   :  { %v844_v37 = vmul.f32 %v1360_v20, %v828_v44  ;;  %v841_v16 = vmul.f32 %v1366_v0, %v825_v31  ;;  %v842_v40 = vmul.f32 %v1369_v43, %v826_v32 }
 0x175   :  { %v923_v50 = vadd.f32 %v909_v39, %v887_v47  ;;  %v924_v63 = vadd.f32 %v909_v39, %v888_v56  ;;  %v834_v47 = vmul.f32 %v1363_v24, %v818_v26 }
 0x176   :  { %v1374_v21 = vpop.permute.xlu1 %857 }
 0x177   :  { %939 = vst [vmem:[#allocation5 + $0x10] sm:$0xff] %v923_v50  ;;  %940 = vst [vmem:[#allocation5 + $0x18] sm:$0xff] %v924_v63  ;;  %v889_v48 = vmul.f32 %v1374_v21, %v833_v46  ;;  %v890_v50 = vmul.f32 %v1374_v21, %v834_v47 }
 0x17a   :  { %v863_v1 = vpop.permute.xlu1 %862 }
 0x17b   :  { %v873_v36 = vpop.permute.xlu0 %872  ;;  %v891_v38 = vmul.f32 %v863_v1, %v835_v33  ;;  %v892_v22 = vmul.f32 %v863_v1, %v836_v34 }
 0x17c   :  { %v895_v3 = vmul.f32 %v873_v36, %v839_v60  ;;  %v896_v6 = vmul.f32 %v873_v36, %v840_v62 }
 0x17e   :  { %v931_v10 = vadd.f32 %v909_v39, %v895_v3  ;;  %v932_v15 = vadd.f32 %v909_v39, %v896_v6 }
 0x17f   :  { %v868_v19 = vpop.permute.xlu1 %867 }
 0x180   :  { %947 = vst [vmem:[#allocation5 + $0x50] sm:$0xff] %v931_v10  ;;  %948 = vst [vmem:[#allocation5 + $0x58] sm:$0xff] %v932_v15  ;;  %v893_v23 = vmul.f32 %v868_v19, %v837_v8  ;;  %v894_v25 = vmul.f32 %v868_v19, %v838_v7 }
 0x182   :  { %v929_v52 = vadd.f32 %v1358_v14, %v893_v23  ;;  %v930_v5 = vadd.f32 %v1358_v14, %v894_v25 }
 0x183   :  { %v883_v29 = vpop.permute.xlu0 %882 }
 0x184   :  { %945 = vst [vmem:[#allocation5 + $0x40] sm:$0xff] %v929_v52  ;;  %946 = vst [vmem:[#allocation5 + $0x48] sm:$0xff] %v930_v5  ;;  %v899_v27 = vmul.f32 %v883_v29, %v843_v35  ;;  %v900_v45 = vmul.f32 %v883_v29, %v844_v37 }
 0x186   :  { %v878_v14 = vpop.permute.xlu1 %877 }
 0x187   :  { %v919_v56 = vpop.permute.xlu0 %918  ;;  %v897_v63 = vmul.f32 %v878_v14, %v841_v16  ;;  %v898_v51 = vmul.f32 %v878_v14, %v842_v40 }
 0x188   :  { %v927_v49 = vadd.f32 %v919_v56, %v891_v38  ;;  %v928_v41 = vadd.f32 %v919_v56, %v892_v22  ;;  %v935_v39 = vadd.f32 %v919_v56, %v899_v27  ;;  %v936_v20 = vadd.f32 %v919_v56, %v900_v45 }
 0x18a   :  { %943 = vst [vmem:[#allocation5 + $0x30] sm:$0xff] %v927_v49  ;;  %944 = vst [vmem:[#allocation5 + $0x38] sm:$0xff] %v928_v41  ;;  %v914_v9 = vpop.permute.xlu1 %913 }
 0x18b   :  { %951 = vst [vmem:[#allocation5 + $0x70] sm:$0xff] %v935_v39  ;;  %952 = vst [vmem:[#allocation5 + $0x78] sm:$0xff] %v936_v20  ;;  %v925_v24 = vadd.f32 %v914_v9, %v889_v48  ;;  %v926_v0 = vadd.f32 %v914_v9, %v890_v50  ;;  %v933_v43 = vadd.f32 %v914_v9, %v897_v63 }
 0x18c   :  { %v934_v18 = vadd.f32 %v914_v9, %v898_v51 }
 0x18d   :  { %941 = vst [vmem:[#allocation5 + $0x20] sm:$0xff] %v925_v24  ;;  %942 = vst [vmem:[#allocation5 + $0x28] sm:$0xff] %v926_v0 }
 0x18e   :  { %949 = vst [vmem:[#allocation5 + $0x60] sm:$0xff] %v933_v43  ;;  %950 = vst [vmem:[#allocation5 + $0x68] sm:$0xff] %v934_v18 }
 0x18f   :  { %1098 = shalt.err (!%p1095_p9)
}
 0x190   :  { %964 = dma.vmem_to_hbm [thread:$0]  %s959_s11, 2048, %s1398_s2, [#allocation4], %s1112_s12, %s1112_s12, %s1113_s13  }
 0x191   :  { %1109 = dma.done.wait [#allocation4], 2048  }
 0x192   :  { %1110 = vsyncadd [#allocation4], 4294965248 }
 0x193   :  { %968 = vsyncpa [#allocation3], 1 }
 0x194   :  { %969 = vsyncpa [#allocation4], 1 }

</bundles_post_ra>
